<compile_context>
chip_gen: v7x
topology: tpu7x:2x2x1
jax: 0.10.0
libtpu: 0.0.40
codegen_flags: <defaults>
</compile_context>

<pallas_src>
import functools
import math

import jax
import jax.numpy as jnp
from jax.experimental import pallas as pl
from jax.experimental.pallas import tpu as pltpu


def _round_up(a: int, b: int) -> int:
    return -(-a // b) * b


def _sage_kernel(adj_ref, h_ref, invdeg_ref, r_ref, out_ref, *,
                 tile_k: int, resident_h: bool):
    # adj_ref    : (TN, TK)        0/1(+multiplicity) adjacency tile (dst x src)
    # h_ref      : (TK, Fp) or (N_pad, Fp) if resident  -- H = X @ W_l^T
    # invdeg_ref : (TN, 1) f32     per-destination 1/deg (mean normalization)
    # r_ref      : (TN, Fp) f32    R = X @ W_r^T + b   (root / self term)
    # out_ref    : (TN, Fp) f32    resident across the k axis (accumulator)
    k = pl.program_id(1)

    @pl.when(k == 0)
    def _():
        out_ref[...] = jnp.zeros_like(out_ref)

    if resident_h:
        k0 = pl.multiple_of(k * tile_k, tile_k)
        h = h_ref[pl.ds(k0, tile_k), :]
    else:
        h = h_ref[...]

    out_ref[...] += jnp.dot(adj_ref[...], h,
                            preferred_element_type=jnp.float32)

    @pl.when(k == pl.num_programs(1) - 1)
    def _():
        out_ref[...] = out_ref[...] * invdeg_ref[...] + r_ref[...]


def sage_conv_pallas(x, edge_index, w_l, w_r, b_l, *,
                     tile_n=512, tile_k=2048,
                     matmul_dtype=jnp.bfloat16,
                     resident_h=None,
                     vmem_limit_bytes=32 * 1024 * 1024):
    """x: [N, Fin] f32, edge_index: [2, E] int32,
       w_l / w_r: [Fout, Fin] (PyTorch Linear layout), b_l: [Fout]."""
    N, Fin = x.shape
    Fout = w_l.shape[0]

    # ---- tiling / padding geometry -------------------------------------
    Fp = _round_up(Fout, 128)                      # lane-dense output width
    n128 = _round_up(N, 128)
    tile_n = _round_up(min(int(tile_n), n128), 8)
    N_pad = _round_up(N, math.lcm(tile_n, 128))    # divisible by tile_n & 128
    tile_k = min(int(tile_k), N_pad)
    tile_k = max((tile_k // 128) * 128, 128)
    while N_pad % tile_k:                          # make tile_k divide N_pad
        tile_k -= 128

    if resident_h is None:
        # Keep resident H (incl. its double buffer) under ~8 MiB so it fits
        # comfortably even inside v7x's 64 MiB physical VMEM next to adj tiles.
        resident_h = (2 * N_pad * Fp * jnp.dtype(matmul_dtype).itemsize) <= (8 << 20)

    # ---- glue math in plain JAX (cheap next to the O(N^2) matmul) -------
    src = edge_index[0].astype(jnp.int32)
    dst = edge_index[1].astype(jnp.int32)

    # Unnormalized 0/1(+multiplicity) adjacency, built directly at padded size
    # in the narrow matmul dtype (exact values; no padded-f32 intermediate).
    adj_p = jnp.zeros((N_pad, N_pad), matmul_dtype).at[dst, src].add(
        jnp.ones((src.shape[0],), matmul_dtype))

    # Per-destination 1/deg, applied in f32 in the kernel epilogue (exact mean;
    # isolated nodes keep agg = 0 because their accumulated row is all-zero).
    deg = jnp.zeros((N,), jnp.float32).at[dst].add(1.0)
    inv_deg = 1.0 / jnp.maximum(deg, 1.0)
    invdeg_p = jnp.zeros((N_pad, 1), jnp.float32).at[:N, 0].set(inv_deg)

    # Reassociated math: kernel hot path is a single MXU matmul
    #   out_tile = (adj_tile @ H) * inv_deg + R_tile
    xf = x.astype(jnp.float32)
    H = xf @ w_l.T.astype(jnp.float32)                               # (N, Fout)
    R = xf @ w_r.T.astype(jnp.float32) + b_l.astype(jnp.float32)[None, :]
    H_p = jnp.zeros((N_pad, Fp), matmul_dtype).at[:N, :Fout].set(
        H.astype(matmul_dtype))
    R_p = jnp.zeros((N_pad, Fp), jnp.float32).at[:N, :Fout].set(R)

    grid = (N_pad // tile_n, N_pad // tile_k)

    if resident_h:
        h_spec = pl.BlockSpec((N_pad, Fp), lambda i, k: (0, 0))   # loaded once
    else:
        h_spec = pl.BlockSpec((tile_k, Fp), lambda i, k: (k, 0))

    kernel = functools.partial(_sage_kernel, tile_k=tile_k,
                               resident_h=resident_h)

    out_p = pl.pallas_call(
        kernel,
        out_shape=jax.ShapeDtypeStruct((N_pad, Fp), jnp.float32),
        grid_spec=pltpu.PrefetchScalarGridSpec(
            num_scalar_prefetch=0,
            grid=grid,
            in_specs=[
                pl.BlockSpec((tile_n, tile_k), lambda i, k: (i, k)),   # adj
                h_spec,                                                # H
                pl.BlockSpec((tile_n, 1), lambda i, k: (i, 0)),        # 1/deg
                pl.BlockSpec((tile_n, Fp), lambda i, k: (i, 0)),       # R
            ],
            out_specs=pl.BlockSpec((tile_n, Fp), lambda i, k: (i, 0)),
        ),
        compiler_params=pltpu.CompilerParams(
            dimension_semantics=("parallel", "arbitrary"),
            vmem_limit_bytes=vmem_limit_bytes),
    )(adj_p, H_p, invdeg_p, R_p)

    return out_p[:N, :Fout].astype(x.dtype)


def sage_conv_ref(x, edge_index, w_l, w_r, b_l):
    """Pure-JAX f32 reference mirroring torch_geometric.nn.SAGEConv defaults."""
    N = x.shape[0]
    src, dst = edge_index[0], edge_index[1]
    adj = jnp.zeros((N, N), jnp.float32).at[dst, src].add(1.0)
    deg = adj.sum(axis=1, keepdims=True)
    agg = (adj @ x) / jnp.maximum(deg, 1.0)
    return agg @ w_l.T + x @ w_r.T + b_l[None, :]


if __name__ == "__main__":
    key = jax.random.PRNGKey(0)
    k_x, k_e, k_wl, k_wr, k_b = jax.random.split(key, 5)

    # LayerConfig(dim_in=8, dim_out=32); small graph: 16 nodes, 40 edges
    N, Fin, Fout, E = 16, 8, 32, 40

    x = jax.random.normal(k_x, (N, Fin), dtype=jnp.float32)
    edge_index = jax.random.randint(k_e, (2, E), 0, N, dtype=jnp.int32)

    # Parameter shapes of pyg.nn.SAGEConv(dim_in, dim_out, bias=True)
    w_l = jax.random.normal(k_wl, (Fout, Fin), dtype=jnp.float32) * 0.1  # lin_l.weight
    w_r = jax.random.normal(k_wr, (Fout, Fin), dtype=jnp.float32) * 0.1  # lin_r.weight
    b_l = jax.random.normal(k_b, (Fout,), dtype=jnp.float32) * 0.1       # lin_l.bias

    # 1) defaults (large tiles clamped to graph size; resident-H path)
    out = jax.block_until_ready(sage_conv_pallas(x, edge_index, w_l, w_r, b_l))
    ref = sage_conv_ref(x, edge_index, w_l, w_r, b_l)
    assert out.shape == (N, Fout)
    assert jnp.allclose(out, ref, atol=2e-2, rtol=2e-2), "mismatch (defaults)"

    # 2) larger graph, small tiles, H streamed per k-block (tiled-H path,
    #    multiple k steps, multiple destination tiles)
    N2, E2 = 256, 800
    k_x2, k_e2 = jax.random.split(jax.random.PRNGKey(1), 2)
    x2 = jax.random.normal(k_x2, (N2, Fin), dtype=jnp.float32)
    ei2 = jax.random.randint(k_e2, (2, E2), 0, N2, dtype=jnp.int32)
    out2 = jax.block_until_ready(
        sage_conv_pallas(x2, ei2, w_l, w_r, b_l,
                         tile_n=64, tile_k=128, resident_h=False))
    ref2 = sage_conv_ref(x2, ei2, w_l, w_r, b_l)
    assert out2.shape == (N2, Fout)
    assert jnp.allclose(out2, ref2, atol=2e-2, rtol=2e-2), "mismatch (tiled H)"

    # 3) same graph, resident-H path with multiple k steps (exercises the
    #    in-kernel pl.ds slice of the resident H block)
    out3 = jax.block_until_ready(
        sage_conv_pallas(x2, ei2, w_l, w_r, b_l,
                         tile_n=128, tile_k=128, resident_h=True))
    assert jnp.allclose(out3, ref2, atol=2e-2, rtol=2e-2), "mismatch (resident H)"

    print("KERNEL_OK")
</pallas_src>

<mosaic_0001>
module attributes {stable_mosaic.version = 11 : i64} {
  func.func @_sage_kernel(%arg0: i32, %arg1: i32, %arg2: memref<128x128xbf16, #tpu.memory_space<vmem>>, %arg3: memref<128x128xbf16, #tpu.memory_space<vmem>>, %arg4: memref<128x1xf32, #tpu.memory_space<vmem>>, %arg5: memref<128x128xf32, #tpu.memory_space<vmem>>, %arg6: memref<128x128xf32, #tpu.memory_space<vmem>>) attributes {dimension_semantics = [#tpu.dimension_semantics<parallel>, #tpu.dimension_semantics<arbitrary>], iteration_bounds = array<i64: 1, 1>, scalar_prefetch = 0 : i64, scratch_operands = 0 : i64, tpu.core_type = #tpu.core_type<tc>, window_params = [{transform_indices = @transform_0, window_bounds = array<i64: 128, 128>}, {pipeline_mode = #tpu.pipeline_mode<synchronous>, transform_indices = @transform_1, window_bounds = array<i64: 128, 128>}, {transform_indices = @transform_2, window_bounds = array<i64: 128, 1>}, {transform_indices = @transform_3, window_bounds = array<i64: 128, 128>}, {transform_indices = @transform_4, window_bounds = array<i64: 128, 128>}]} {
    %c0_i32 = arith.constant 0 : i32
    %0 = arith.cmpi eq, %arg1, %c0_i32 : i32
    %1 = arith.extui %0 : i1 to i32
    %c0_i32_0 = arith.constant 0 : i32
    %2 = arith.cmpi ne, %1, %c0_i32_0 : i32
    scf.if %2 {
      %cst_9 = arith.constant 0.000000e+00 : f32
      %15 = vector.broadcast %cst_9 : f32 to vector<128x128xf32>
      %c0_10 = arith.constant 0 : index
      %c0_11 = arith.constant 0 : index
      %16 = vector.load %arg6[%c0_10, %c0_11] : memref<128x128xf32, #tpu.memory_space<vmem>>, vector<128x128xf32>
      tpu.vector_store %arg6[%c0_10, %c0_11], %15 {strides = array<i32>} : memref<128x128xf32, #tpu.memory_space<vmem>>, vector<128x128xf32>,
    } else {
    }
    %c128_i32 = arith.constant 128 : i32
    %3 = arith.muli %arg1, %c128_i32 : i32
    %4 = tpu.assume_multiple %3, 128 : i32
    %5 = arith.index_cast %4 : i32 to index
    %c0 = arith.constant 0 : index
    %6 = vector.load %arg3[%5, %c0] : memref<128x128xbf16, #tpu.memory_space<vmem>>, vector<128x128xbf16>
    %c0_1 = arith.constant 0 : index
    %c0_2 = arith.constant 0 : index
    %7 = vector.load %arg6[%c0_1, %c0_2] : memref<128x128xf32, #tpu.memory_space<vmem>>, vector<128x128xf32>
    %c0_3 = arith.constant 0 : index
    %c0_4 = arith.constant 0 : index
    %8 = vector.load %arg2[%c0_3, %c0_4] : memref<128x128xbf16, #tpu.memory_space<vmem>>, vector<128x128xbf16>
    %cst = arith.constant dense<0.000000e+00> : vector<128x128xf32>
    %9 = tpu.matmul %8, %6, %cst {dimension_numbers = #tpu.dot_dimension_numbers<[1], [0], [0], [1], [0, 0, 1, 1], [], []>} : vector<128x128xbf16>, vector<128x128xbf16>, vector<128x128xf32> -> vector<128x128xf32>
    %10 = arith.addf %7, %9 : vector<128x128xf32>
    %c0_5 = arith.constant 0 : index
    %c0_6 = arith.constant 0 : index
    %11 = vector.load %arg6[%c0_5, %c0_6] : memref<128x128xf32, #tpu.memory_space<vmem>>, vector<128x128xf32>
    tpu.vector_store %arg6[%c0_5, %c0_6], %10 {strides = array<i32>} : memref<128x128xf32, #tpu.memory_space<vmem>>, vector<128x128xf32>,
    %c0_i32_7 = arith.constant 0 : i32
    %12 = arith.cmpi eq, %arg1, %c0_i32_7 : i32
    %13 = arith.extui %12 : i1 to i32
    %c0_i32_8 = arith.constant 0 : i32
    %14 = arith.cmpi ne, %13, %c0_i32_8 : i32
    scf.if %14 {
      %c0_9 = arith.constant 0 : index
      %c0_10 = arith.constant 0 : index
      %15 = vector.load %arg6[%c0_9, %c0_10] : memref<128x128xf32, #tpu.memory_space<vmem>>, vector<128x128xf32>
      %c0_11 = arith.constant 0 : index
      %c0_12 = arith.constant 0 : index
      %16 = vector.load %arg4[%c0_11, %c0_12] : memref<128x1xf32, #tpu.memory_space<vmem>>, vector<128x1xf32>
      %17 = vector.broadcast %16 : vector<128x1xf32> to vector<128x128xf32>
      %18 = arith.mulf %15, %17 : vector<128x128xf32>
      %c0_13 = arith.constant 0 : index
      %c0_14 = arith.constant 0 : index
      %19 = vector.load %arg5[%c0_13, %c0_14] : memref<128x128xf32, #tpu.memory_space<vmem>>, vector<128x128xf32>
      %20 = arith.addf %18, %19 : vector<128x128xf32>
      %c0_15 = arith.constant 0 : index
      %c0_16 = arith.constant 0 : index
      %21 = vector.load %arg6[%c0_15, %c0_16] : memref<128x128xf32, #tpu.memory_space<vmem>>, vector<128x128xf32>
      tpu.vector_store %arg6[%c0_15, %c0_16], %20 {strides = array<i32>} : memref<128x128xf32, #tpu.memory_space<vmem>>, vector<128x128xf32>,
    } else {
    }
    return
  }
  func.func @transform_0(%arg0: i32, %arg1: i32) -> (i32, i32) {
    %c0_i32 = arith.constant 0 : i32
    return %arg0, %arg1 : i32, i32
  }
  func.func @transform_1(%arg0: i32, %arg1: i32) -> (i32, i32) {
    %c0_i32 = arith.constant 0 : i32
    %c0_i32_0 = arith.constant 0 : i32
    %c0_i32_1 = arith.constant 0 : i32
    return %c0_i32, %c0_i32_0 : i32, i32
  }
  func.func @transform_2(%arg0: i32, %arg1: i32) -> (i32, i32) {
    %c0_i32 = arith.constant 0 : i32
    %c0_i32_0 = arith.constant 0 : i32
    return %arg0, %c0_i32 : i32, i32
  }
  func.func @transform_3(%arg0: i32, %arg1: i32) -> (i32, i32) {
    %c0_i32 = arith.constant 0 : i32
    %c0_i32_0 = arith.constant 0 : i32
    return %arg0, %c0_i32 : i32, i32
  }
  func.func @transform_4(%arg0: i32, %arg1: i32) -> (i32, i32) {
    %c0_i32 = arith.constant 0 : i32
    %c0_i32_0 = arith.constant 0 : i32
    return %arg0, %c0_i32 : i32, i32
  }
}

</mosaic_0001>

<bundles_post_ra>
// kernel: tpu_custom_call.1
= control target key start
LH: loop header
LB: loop body
LE: loop exit
PB: predicated region body
PF: predicated region fallthrough
CT: control target
= control target key end

     0   :  { %9 = vsyncpa [#allocation3], 0  ;;  %s897_s0 = inlined_call_operand.hbm [shape: bf16[128,128], index: 0, kind: input, shape index: {}]   ;;  %s898_s1 = inlined_call_operand.hbm [shape: bf16[128,128], index: 1, kind: input, shape index: {}]   ;;  %s899_s2 = inlined_call_operand.vmem [shape: f32[128,1], index: 2, kind: input, shape index: {}]   ;;  %s900_s3 = inlined_call_operand.vmem [shape: f32[128,128], index: 3, kind: input, shape index: {}]   ;;  %s901_s4 = inlined_call_operand.hbm [shape: f32[128,128], index: 4, kind: output, shape index: {}]  }
   0x1   :  { %10 = vsyncpa [#allocation6], 0 }
   0x2   :  { %11 = vsyncpa [#allocation4], 0  ;;  %s723_s15 = smov [#allocation2]   ;;  %s651_s19 = scalar_lea.hbm %s897_s0, 1024 }
   0x3   :  { %s17_s16 = sshll.u32 %s723_s15, 4  ;;  %p652_p0 = scmp.ne.s32.totalorder %s897_s0, %s651_s19  ;;  %s18_s16 = int_to_ptr.vmem [resolvable:$true] %s17_s16 }
   0x4   :  { %p655_p1 = scmp.lt.u32.totalorder %s651_s19, %s897_s0 }
   0x6   :  { %p657_p2 = pnand %p655_p1, %p652_p0 }
   0x8   :  { %660 = shalt.err (!%p657_p2)
}
   0x9   :  { %s661_s24 = scalar_lea.vmem %s18_s16, 1024  ;;  %p666_p4 = scmp.lt.s32.totalorder %s18_s16, %s18_s16 }
   0xa   :  { %p662_p3 = scmp.ne.s32.totalorder %s18_s16, %s661_s24  ;;  %p667_p5 = scmp.lt.s32.totalorder %s661_s24, %s661_s24 }
   0xc   :  { %p668_p6 = por %p667_p5, %p666_p4 }
   0xe   :  { %p669_p7 = pnand %p668_p6, %p662_p3 }
  0x10   :  { %672 = shalt.err (!%p669_p7)
}
  0x11   :  { %s724_s25 = smov 64   ;;  %s725_s26 = smov 4  }
  0x12   :  { %23 = dma.hbm_to_vmem [thread:$0]  %s897_s0, 1024, %s18_s16, [#allocation3], %s724_s25, %s724_s25, %s725_s26  }
  0x13   :  { %s726_s29 = smov [#allocation5]   ;;  %s673_s7 = scalar_lea.hbm %s898_s1, 1024 }
  0x14   :  { %s29_s30 = sshll.u32 %s726_s29, 4  ;;  %p674_p8 = scmp.ne.s32.totalorder %s898_s1, %s673_s7  ;;  %s30_s30 = int_to_ptr.vmem [resolvable:$true] %s29_s30 }
  0x15   :  { %p677_p9 = scmp.lt.u32.totalorder %s673_s7, %s898_s1 }
  0x17   :  { %p679_p10 = pnand %p677_p9, %p674_p8 }
  0x19   :  { %682 = shalt.err (!%p679_p10)
}
  0x1a   :  { %s683_s12 = scalar_lea.vmem %s30_s30, 1024  ;;  %p688_p12 = scmp.lt.s32.totalorder %s30_s30, %s30_s30 }
  0x1b   :  { %p684_p11 = scmp.ne.s32.totalorder %s30_s30, %s683_s12  ;;  %p689_p13 = scmp.lt.s32.totalorder %s683_s12, %s683_s12 }
  0x1d   :  { %p690_p0 = por %p689_p13, %p688_p12 }
  0x1f   :  { %p691_p1 = pnand %p690_p0, %p684_p11 }
  0x21   :  { %694 = shalt.err (!%p691_p1)
}
  0x22   :  { %35 = dma.hbm_to_vmem [thread:$0]  %s898_s1, 1024, %s30_s30, [#allocation6], %s724_s25, %s724_s25, %s725_s26  }
  0x23   :  { %717 = dma.done.wait [#allocation3], 1024  }
  0x24   :  { %718 = vsyncadd [#allocation3], 4294966272 }
  0x25   :  { %719 = dma.done.wait [#allocation6], 1024  }
  0x26   :  { %720 = vsyncadd [#allocation6], 4294966272  ;;  %v727_v0 = vmov 0   ;;  %v635_v1 = vld [vmem:[#allocation5] sm:$0xff]   ;;  %v636_v2 = vld [vmem:[#allocation5 + $0x8] sm:$0xff]   ;;  %s728_s16 = smov [#allocation7]  }
  0x27   :  { %634 = vset.pattern.permute.xlu1 %v727_v0  ;;  %633 = vset.pattern.permute.xlu0 %v727_v0  ;;  %v637_v3 = vld [vmem:[#allocation5 + $0x10] sm:$0xff]   ;;  %v638_v4 = vld [vmem:[#allocation5 + $0x18] sm:$0xff]   ;;  %v643_v5 = vld [vmem:[#allocation2] sm:$0xff]  }
  0x28   :  { %576 = vmatprep.subr.bf16.mxu0 %v635_v1  ;;  %608 = vmatprep.subr.bf16.mxu1 %v635_v1  ;;  %v644_v6 = vld [vmem:[#allocation2 + $0x20] sm:$0xff]   ;;  %v640_v8 = vld [vmem:[#allocation5 + $0x28] sm:$0xff]   ;;  %v366_v9 = vld [vmem:[%s899_s2 + $0x10] sm:$0xff] }
  0x29   :  { %577 = vmatpush3.bf16.msra.mxu0 %v635_v1  ;;  %616 = vmatpush3.bf16.msra.mxu1 %v635_v1  ;;  %v639_v7 = vld [vmem:[#allocation5 + $0x20] sm:$0xff]   ;;  %v367_v11 = vld [vmem:[%s899_s2 + $0x18] sm:$0xff]  ;;  %v365_v12 = vld [vmem:[%s899_s2 + $0x8] sm:$0xff] }
  0x2a   :  { %578 = vmatprep.subr.bf16.mxu0 %v636_v2  ;;  %609 = vmatprep.subr.bf16.mxu1 %v636_v2  ;;  %v364_v10 = vld [vmem:[%s899_s2] sm:$0xff]  ;;  %v641_v13 = vld [vmem:[#allocation5 + $0x30] sm:$0xff]   ;;  %v369_v14 = vld [vmem:[%s899_s2 + $0x28] sm:$0xff] }
  0x2b   :  { %592 = vmatprep.mubr.bf16.mxu0 %v643_v5  ;;  %600 = vmatprep.mubr.bf16.mxu1 %v644_v6  ;;  %v368_v15 = vld [vmem:[%s899_s2 + $0x20] sm:$0xff]  ;;  %v642_v16 = vld [vmem:[#allocation5 + $0x38] sm:$0xff]   ;;  %v370_v18 = vld [vmem:[%s899_s2 + $0x30] sm:$0xff] }
  0x2c   :  { %392 = vperm.xlu1 %634, %v366_v9   ;;  %382 = vperm.xlu0 %633, %v364_v10   ;;  %v371_v17 = vld [vmem:[%s899_s2 + $0x38] sm:$0xff]  ;;  %v645_v19 = vld [vmem:[#allocation2 + $0x8] sm:$0xff]   ;;  %v372_v22 = vld [vmem:[%s899_s2 + $0x40] sm:$0xff] }
  0x2d   :  { %579 = vmatpush3.bf16.msra.mxu0 %v636_v2  ;;  %617 = vmatpush3.bf16.msra.mxu1 %v636_v2  ;;  %v646_v20 = vld [vmem:[#allocation2 + $0x28] sm:$0xff]   ;;  %v647_v23 = vld [vmem:[#allocation2 + $0x10] sm:$0xff]   ;;  %v375_v25 = vld [vmem:[%s899_s2 + $0x58] sm:$0xff] }
  0x2e   :  { %580 = vmatprep.subr.bf16.mxu0 %v637_v3  ;;  %610 = vmatprep.subr.bf16.mxu1 %v637_v3  ;;  %v373_v21 = vld [vmem:[%s899_s2 + $0x48] sm:$0xff]  ;;  %v648_v24 = vld [vmem:[#allocation2 + $0x30] sm:$0xff]   ;;  %v649_v27 = vld [vmem:[#allocation2 + $0x18] sm:$0xff]  }
  0x2f   :  { %v374_v26 = vld [vmem:[%s899_s2 + $0x50] sm:$0xff]  ;;  %v650_v28 = vld [vmem:[#allocation2 + $0x38] sm:$0xff]   ;;  %v377_v29 = vld [vmem:[%s899_s2 + $0x68] sm:$0xff] }
  0x30   :  { %397 = vperm.xlu1 %634, %v367_v11   ;;  %387 = vperm.xlu0 %633, %v365_v12   ;;  %v376_v30 = vld [vmem:[%s899_s2 + $0x60] sm:$0xff]  ;;  %v379_v31 = vld [vmem:[%s899_s2 + $0x78] sm:$0xff]  ;;  %v378_v32 = vld [vmem:[%s899_s2 + $0x70] sm:$0xff]  ;;  %s529_s2 = sshll.u32 %s728_s16, 4  ;;  %s530_s2 = int_to_ptr.vmem [resolvable:$true] %s529_s2 }
  0x31   :  { %581 = vmatpush3.bf16.msra.mxu0 %v637_v3  ;;  %618 = vmatpush3.bf16.msra.mxu1 %v637_v3  ;;  %v478_v50 = vld [vmem:[%s900_s3 + $0x10] sm:$0xff]  ;;  %v476_v56 = vld [vmem:[%s900_s3] sm:$0xff]  ;;  %v479_v62 = vld [vmem:[%s900_s3 + $0x18] sm:$0xff]  ;;  %s695_s21 = scalar_lea.vmem %s530_s2, 2048  ;;  %p700_p3 = scmp.lt.s32.totalorder %s530_s2, %s530_s2 }
  0x32   :  { %582 = vmatprep.subr.bf16.mxu0 %v638_v4  ;;  %611 = vmatprep.subr.bf16.mxu1 %v638_v4  ;;  %v486_v51 = vld [vmem:[%s900_s3 + $0x50] sm:$0xff]  ;;  %v484_v57 = vld [vmem:[%s900_s3 + $0x40] sm:$0xff]  ;;  %v487_v63 = vld [vmem:[%s900_s3 + $0x58] sm:$0xff]  ;;  %p696_p2 = scmp.ne.s32.totalorder %s530_s2, %s695_s21  ;;  %p701_p4 = scmp.lt.s32.totalorder %s695_s21, %s695_s21 }
  0x33   :  { %v485_v5 = vld [vmem:[%s900_s3 + $0x48] sm:$0xff] }
  0x34   :  { %407 = vperm.xlu1 %634, %v369_v14   ;;  %402 = vperm.xlu0 %633, %v368_v15   ;;  %p702_p5 = por %p701_p4, %p700_p3 }
  0x35   :  { %583 = vmatpush3.bf16.msra.mxu0 %v638_v4  ;;  %619 = vmatpush3.bf16.msra.mxu1 %v638_v4  ;;  %v477_v4 = vld [vmem:[%s900_s3 + $0x8] sm:$0xff] }
  0x36   :  { %584 = vmatprep.subr.bf16.mxu0 %v639_v7  ;;  %612 = vmatprep.subr.bf16.mxu1 %v639_v7  ;;  %p703_p6 = pnand %p702_p5, %p696_p2 }
  0x38   :  { %417 = vperm.xlu1 %634, %v371_v17   ;;  %412 = vperm.xlu0 %633, %v370_v18  }
  0x39   :  { %585 = vmatpush3.bf16.msra.mxu0 %v639_v7  ;;  %620 = vmatpush3.bf16.msra.mxu1 %v639_v7 }
  0x3a   :  { %586 = vmatprep.subr.bf16.mxu0 %v640_v8  ;;  %613 = vmatprep.subr.bf16.mxu1 %v640_v8 }
  0x3c   :  { %427 = vperm.xlu1 %634, %v373_v21   ;;  %422 = vperm.xlu0 %633, %v372_v22   ;;  %v490_v21 = vld [vmem:[%s900_s3 + $0x70] sm:$0xff] }
  0x3d   :  { %587 = vmatpush3.bf16.msra.mxu0 %v640_v8  ;;  %621 = vmatpush3.bf16.msra.mxu1 %v640_v8 }
  0x3e   :  { %588 = vmatprep.subr.bf16.mxu0 %v641_v13  ;;  %614 = vmatprep.subr.bf16.mxu1 %v641_v13 }
  0x40   :  { %437 = vperm.xlu1 %634, %v375_v25   ;;  %432 = vperm.xlu0 %633, %v374_v26   ;;  %v480_v26 = vld [vmem:[%s900_s3 + $0x20] sm:$0xff] }
  0x41   :  { %589 = vmatpush3.bf16.msra.mxu0 %v641_v13  ;;  %622 = vmatpush3.bf16.msra.mxu1 %v641_v13 }
  0x42   :  { %590 = vmatprep.subr.bf16.mxu0 %v642_v16  ;;  %615 = vmatprep.subr.bf16.mxu1 %v642_v16 }
  0x44   :  { %447 = vperm.xlu1 %634, %v377_v29   ;;  %442 = vperm.xlu0 %633, %v376_v30  }
  0x45   :  { %591 = vmatpush3.bf16.msra.mxu0 %v642_v16  ;;  %623 = vmatpush3.bf16.msra.mxu1 %v642_v16 }
  0x48   :  { %593 = vmatmul.mubr.bf16.vlgmr.msra.gmra.mrb[0].mxu0 %v645_v19  ;;  %601 = vmatmul.mubr.bf16.vlgmr.msra.gmra.mrb[0].mxu1 %v646_v20  ;;  %v482_v20 = vld [vmem:[%s900_s3 + $0x30] sm:$0xff] }
  0x49   :  { %596 = vmatprep.mubr.bf16.mxu0 %v647_v23  ;;  %604 = vmatprep.mubr.bf16.mxu1 %v648_v24 }
  0x4a   :  { %457 = vperm.xlu1 %634, %v379_v31   ;;  %452 = vperm.xlu0 %633, %v378_v32  }
  0x50   :  { %597 = vmatmul.mubr.bf16.gmra.mrb[4].mxu0 %v649_v27  ;;  %605 = vmatmul.mubr.bf16.gmra.mrb[4].mxu1 %v650_v28  ;;  %v488_v27 = vld [vmem:[%s900_s3 + $0x60] sm:$0xff] }
  0xab   :  { %v383_v33 = vpop.permute.xlu0 %382  ;;  %v393_v34 = vpop.permute.xlu1 %392 }
  0xaf   :  { %v388_v35 = vpop.permute.xlu0 %387  ;;  %v398_v36 = vpop.permute.xlu1 %397 }
  0xb3   :  { %v828_v37 = vpop.permute.xlu0 %402  ;;  %v830_v38 = vpop.permute.xlu1 %407 }
  0xb7   :  { %v413_v39 = vpop.permute.xlu0 %412  ;;  %v832_v40 = vpop.permute.xlu1 %417 }
  0xbb   :  { %v423_v41 = vpop.permute.xlu0 %422  ;;  %v428_v42 = vpop.permute.xlu1 %427 }
  0xbf   :  { %v433_v43 = vpop.permute.xlu0 %432  ;;  %v438_v44 = vpop.permute.xlu1 %437 }
  0xc3   :  { %v443_v45 = vpop.permute.xlu0 %442  ;;  %v448_v6 = vpop.permute.xlu1 %447 }
  0xc9   :  { %v453_v11 = vpop.permute.xlu0 %452  ;;  %v458_v30 = vpop.permute.xlu1 %457 }
 0x11b   :  { %v594_v46 = vpop.f32.mrb[0].mxu0  ;;  %v602_v47 = vpop.f32.mrb[0].mxu1 }
 0x11c   :  { %v250_v48 = vpop.f32.mrb[1].mxu0  ;;  %v282_v49 = vpop.f32.mrb[1].mxu1  ;;  %v462_v54 = vmul.f32 %v594_v46, %v393_v34  ;;  %v470_v55 = vmul.f32 %v602_v47, %v433_v43  ;;  %v491_v34 = vld [vmem:[%s900_s3 + $0x78] sm:$0xff] }
 0x11d   :  { %v595_v52 = vpop.f32.mrb[2].mxu0  ;;  %v603_v53 = vpop.f32.mrb[2].mxu1  ;;  %v460_v60 = vmul.f32 %v383_v33, %v250_v48  ;;  %v468_v61 = vmul.f32 %v423_v41, %v282_v49  ;;  %v483_v33 = vld [vmem:[%s900_s3 + $0x38] sm:$0xff] }
 0x11e   :  { %v253_v58 = vpop.f32.mrb[3].mxu0  ;;  %v285_v59 = vpop.f32.mrb[3].mxu1  ;;  %v494_v0 = vadd.f32 %v478_v50, %v462_v54  ;;  %v502_v1 = vadd.f32 %v486_v51, %v470_v55  ;;  %v463_v2 = vmul.f32 %v595_v52, %v398_v36  ;;  %v471_v3 = vmul.f32 %v603_v53, %v438_v44 }
 0x11f   :  { %v492_v7 = vadd.f32 %v476_v56, %v460_v60  ;;  %v500_v8 = vadd.f32 %v484_v57, %v468_v61  ;;  %v461_v9 = vmul.f32 %v388_v35, %v253_v58  ;;  %v469_v10 = vmul.f32 %v428_v42, %v285_v59  ;;  %v489_v42 = vld [vmem:[%s900_s3 + $0x68] sm:$0xff] }
 0x120   :  { %510 = vst [vmem:[#allocation7 + $0x10] sm:$0xff] %v494_v0  ;;  %518 = vst [vmem:[#allocation7 + $0x50] sm:$0xff] %v502_v1  ;;  %v495_v12 = vadd.f32 %v479_v62, %v463_v2  ;;  %v503_v13 = vadd.f32 %v487_v63, %v471_v3 }
 0x121   :  { %508 = vst [vmem:[#allocation7] sm:$0xff] %v492_v7  ;;  %516 = vst [vmem:[#allocation7 + $0x40] sm:$0xff] %v500_v8  ;;  %v493_v14 = vadd.f32 %v477_v4, %v461_v9  ;;  %v501_v15 = vadd.f32 %v485_v5, %v469_v10 }
 0x122   :  { %511 = vst [vmem:[#allocation7 + $0x18] sm:$0xff] %v495_v12  ;;  %519 = vst [vmem:[#allocation7 + $0x58] sm:$0xff] %v503_v13 }
 0x123   :  { %v598_v16 = vpop.f32.mrb[4].mxu0  ;;  %v606_v17 = vpop.f32.mrb[4].mxu1  ;;  %509 = vst [vmem:[#allocation7 + $0x8] sm:$0xff] %v493_v14  ;;  %517 = vst [vmem:[#allocation7 + $0x48] sm:$0xff] %v501_v15 }
 0x124   :  { %v266_v18 = vpop.f32.mrb[5].mxu0  ;;  %v298_v19 = vpop.f32.mrb[5].mxu1  ;;  %v466_v24 = vmul.f32 %v598_v16, %v413_v39  ;;  %v474_v25 = vmul.f32 %v606_v17, %v453_v11 }
 0x125   :  { %v599_v22 = vpop.f32.mrb[6].mxu0  ;;  %v607_v23 = vpop.f32.mrb[6].mxu1  ;;  %v464_v31 = vmul.f32 %v828_v37, %v266_v18  ;;  %v472_v32 = vmul.f32 %v443_v45, %v298_v19  ;;  %v481_v37 = vld [vmem:[%s900_s3 + $0x28] sm:$0xff] }
 0x126   :  { %v269_v28 = vpop.f32.mrb[7].mxu0  ;;  %v301_v29 = vpop.f32.mrb[7].mxu1  ;;  %v498_v35 = vadd.f32 %v482_v20, %v466_v24  ;;  %v506_v36 = vadd.f32 %v490_v21, %v474_v25  ;;  %v467_v39 = vmul.f32 %v599_v22, %v832_v40  ;;  %v475_v41 = vmul.f32 %v607_v23, %v458_v30 }
 0x127   :  { %v496_v43 = vadd.f32 %v480_v26, %v464_v31  ;;  %v504_v44 = vadd.f32 %v488_v27, %v472_v32  ;;  %v465_v45 = vmul.f32 %v830_v38, %v269_v28  ;;  %v473_v46 = vmul.f32 %v448_v6, %v301_v29 }
 0x128   :  { %514 = vst [vmem:[#allocation7 + $0x30] sm:$0xff] %v498_v35  ;;  %522 = vst [vmem:[#allocation7 + $0x70] sm:$0xff] %v506_v36  ;;  %v499_v47 = vadd.f32 %v483_v33, %v467_v39  ;;  %v507_v48 = vadd.f32 %v491_v34, %v475_v41 }
 0x129   :  { %512 = vst [vmem:[#allocation7 + $0x20] sm:$0xff] %v496_v43  ;;  %520 = vst [vmem:[#allocation7 + $0x60] sm:$0xff] %v504_v44  ;;  %v497_v40 = vadd.f32 %v481_v37, %v465_v45  ;;  %v505_v49 = vadd.f32 %v489_v42, %v473_v46 }
 0x12a   :  { %515 = vst [vmem:[#allocation7 + $0x38] sm:$0xff] %v499_v47  ;;  %523 = vst [vmem:[#allocation7 + $0x78] sm:$0xff] %v507_v48 }
 0x12b   :  { %513 = vst [vmem:[#allocation7 + $0x28] sm:$0xff] %v497_v40  ;;  %521 = vst [vmem:[#allocation7 + $0x68] sm:$0xff] %v505_v49 }
 0x12c   :  { %706 = shalt.err (!%p703_p6)
}
 0x12d   :  { %s707_s23 = scalar_lea.hbm %s901_s4, 2048 }
 0x12e   :  { %p708_p7 = scmp.ne.s32.totalorder %s901_s4, %s707_s23  ;;  %p711_p8 = scmp.lt.u32.totalorder %s707_s23, %s901_s4 }
 0x130   :  { %p713_p9 = pnand %p711_p8, %p708_p7 }
 0x132   :  { %716 = shalt.err (!%p713_p9)
}
 0x133   :  { %s729_s28 = smov 128   ;;  %s730_s29 = smov 8  }
 0x134   :  { %535 = dma.vmem_to_hbm [thread:$0]  %s530_s2, 2048, %s901_s4, [#allocation4], %s729_s28, %s729_s28, %s730_s29  }
 0x135   :  { %721 = dma.done.wait [#allocation4], 2048  }
 0x136   :  { %722 = vsyncadd [#allocation4], 4294965248 }
 0x137   :  { %539 = vsyncpa [#allocation3], 1 }
 0x138   :  { %540 = vsyncpa [#allocation6], 1 }
 0x139   :  { %541 = vsyncpa [#allocation4], 1 }

</bundles_post_ra>
